<compile_context>
chip_gen: v7x
topology: tpu7x:2x2x1
jax: 0.10.0
libtpu: 0.0.40
codegen_flags: <defaults>
</compile_context>

<pallas_src>
import functools

import jax
import jax.numpy as jnp
from jax.experimental import pallas as pl
from jax.experimental.pallas import tpu as pltpu


def _conv3x3_kernel(x_ref, m_ref, w_ref, b_ref, o_ref, *, W):
    """3x3 'same' conv as one fused MXU matmul with a register-resident im2col.

    x_ref: (1, Cin, L)    input, channels on sublanes, flat spatial on lanes
    m_ref: (9, L)         per-tap multiplicative boundary masks (0/1 floats)
    w_ref: (Cout, 9*Cin)  flattened weights, tap-major / channel-minor
    b_ref: (Cout, 1)      bias
    o_ref: (1, Cout, L)   output (lane-dense last dim)
    """
    x = x_ref[0]                      # (Cin, L)
    L = x.shape[1]

    pieces = []
    for kh in range(3):
        for kw in range(3):
            dh = kh - 1
            dw = kw - 1
            off = dh * W + dw
            if off == 0:
                shifted = x
            else:
                # shifted[:, p] == x[:, (p + off) mod L]  (XLU lane roll)
                shifted = pltpu.roll(x, shift=(-off) % L, axis=1)
            tap = kh * 3 + kw
            # Zero "same" padding via a single multiply with the precomputed
            # mask row (broadcast over the Cin sublanes).
            pieces.append(shifted * m_ref[tap:tap + 1, :])   # (Cin, L)

    im2col = jnp.concatenate(pieces, axis=0)                 # (9*Cin, L), in vregs

    # Single MXU contraction: (Cout, 9*Cin) @ (9*Cin, L) -> (Cout, L).
    acc = jnp.dot(w_ref[...], im2col, preferred_element_type=jnp.float32)
    acc = acc + b_ref[...]                                   # bias over lanes
    o_ref[0] = acc.astype(o_ref.dtype)


def _tensorcores_per_chip():
    """Best-effort TensorCore count per chip (v7x: 2, v5e/v6e: 1)."""
    try:
        info = pltpu.get_tpu_info()
    except Exception:
        return 1
    for attr in ("num_cores", "tensorcores_per_chip", "cores_per_chip",
                 "num_tensorcores", "core_count"):
        v = getattr(info, attr, None)
        try:
            v = int(v)
        except (TypeError, ValueError):
            continue
        if v in (1, 2):
            return v
    return 1


def mamba_block_forward(x_nchw, weight, bias):
    """Forward pass of MambaBlock (3x3 conv, stride=1, padding=1).

    x_nchw: (N, Cin, H, W)    float32
    weight: (Cout, Cin, 3, 3) float32 (PyTorch OIHW layout)
    bias:   (Cout,)           float32
    returns (N, Cout, H, W)
    """
    N, Cin, H, W = x_nchw.shape
    Cout = weight.shape[0]
    HW = H * W
    K = 9 * Cin

    # OIHW -> (Cout, kh, kw, Cin) -> dense (Cout, 9*Cin), tap-major / ch-minor.
    w2d = jnp.transpose(weight, (0, 2, 3, 1)).reshape(Cout, K)
    b2d = bias.reshape(Cout, 1)

    # Precompute the 9 boundary masks once in the wrapper: mask[tap, p] = 1 if
    # the tap's source pixel for flat position p is inside the HxW window.
    pos = jnp.arange(HW, dtype=jnp.int32)
    rid = pos // W
    cid = pos % W
    mask_rows = []
    for kh in range(3):
        for kw in range(3):
            dh = kh - 1
            dw = kw - 1
            valid = ((rid + dh >= 0) & (rid + dh < H) &
                     (cid + dw >= 0) & (cid + dw < W))
            mask_rows.append(valid.astype(x_nchw.dtype))
    mask_hw = jnp.stack(mask_rows, axis=0)                    # (9, HW)

    kernel = functools.partial(_conv3x3_kernel, W=W)
    n_cores = _tensorcores_per_chip()

    if n_cores >= 2 and N >= 2:
        # v7x-like: one batch element per TensorCore via a parallel grid axis.
        x_in = x_nchw.reshape(N, Cin, HW)                     # contiguous reshape
        out = pl.pallas_call(
            kernel,
            out_shape=jax.ShapeDtypeStruct((N, Cout, HW), x_nchw.dtype),
            grid_spec=pltpu.PrefetchScalarGridSpec(
                num_scalar_prefetch=0,
                grid=(N,),
                in_specs=[
                    pl.BlockSpec((1, Cin, HW), lambda n: (n, 0, 0)),
                    pl.BlockSpec((9, HW), lambda n: (0, 0)),
                    pl.BlockSpec((Cout, K), lambda n: (0, 0)),
                    pl.BlockSpec((Cout, 1), lambda n: (0, 0)),
                ],
                out_specs=pl.BlockSpec((1, Cout, HW), lambda n: (n, 0, 0)),
            ),
            compiler_params=pltpu.CompilerParams(
                dimension_semantics=("parallel",),
            ),
        )(x_in, mask_hw, w2d, b2d)
        return out.reshape(N, Cout, H, W)

    # Single-TC chips (v5e / v6e): fold batch into the lane axis, one grid step.
    L = N * HW
    x_in = jnp.transpose(x_nchw.reshape(N, Cin, HW), (1, 0, 2)).reshape(1, Cin, L)
    mask_l = jnp.tile(mask_hw, (1, N))                        # (9, N*HW)
    out = pl.pallas_call(
        kernel,
        out_shape=jax.ShapeDtypeStruct((1, Cout, L), x_nchw.dtype),
        grid_spec=pltpu.PrefetchScalarGridSpec(
            num_scalar_prefetch=0,
            grid=(1,),
            in_specs=[
                pl.BlockSpec((1, Cin, L), lambda n: (0, 0, 0)),
                pl.BlockSpec((9, L), lambda n: (0, 0)),
                pl.BlockSpec((Cout, K), lambda n: (0, 0)),
                pl.BlockSpec((Cout, 1), lambda n: (0, 0)),
            ],
            out_specs=pl.BlockSpec((1, Cout, L), lambda n: (0, 0, 0)),
        ),
        compiler_params=pltpu.CompilerParams(
            dimension_semantics=("arbitrary",),
        ),
    )(x_in, mask_l, w2d, b2d)
    # (1, Cout, N*HW) -> (Cout, N, HW) -> (N, Cout, H, W)
    return jnp.transpose(out.reshape(Cout, N, HW), (1, 0, 2)).reshape(N, Cout, H, W)


if __name__ == "__main__":
    # Small shapes consistent with the module: batch=2, in_channels=4,
    # out_channels=4, spatial=16x16.
    N, Cin, Cout, H, W = 2, 4, 4, 16, 16

    key = jax.random.PRNGKey(0)
    kx, kw, kb = jax.random.split(key, 3)

    x = jax.random.normal(kx, (N, Cin, H, W), dtype=jnp.float32)

    # Deterministic parameter init mimicking PyTorch Conv2d default
    # (uniform(-b, b), b = 1/sqrt(fan_in)), fan_in = Cin * 3 * 3.
    fan_in = Cin * 3 * 3
    bound = 1.0 / (fan_in ** 0.5)
    weight = jax.random.uniform(kw, (Cout, Cin, 3, 3), dtype=jnp.float32,
                                minval=-bound, maxval=bound)
    bias = jax.random.uniform(kb, (Cout,), dtype=jnp.float32,
                              minval=-bound, maxval=bound)

    out = mamba_block_forward(x, weight, bias)
    out = jax.block_until_ready(out)

    # Reference check against XLA's conv (same semantics as nn.Conv2d).
    ref = jax.lax.conv_general_dilated(
        x, weight, window_strides=(1, 1), padding=((1, 1), (1, 1)),
        dimension_numbers=("NCHW", "OIHW", "NCHW"),
    ) + bias[None, :, None, None]
    ref = jax.block_until_ready(ref)

    assert out.shape == (N, Cout, H, W)
    assert jnp.allclose(out, ref, atol=1e-4, rtol=1e-4), "mismatch vs reference conv"
    print("KERNEL_OK")
</pallas_src>

<mosaic_0001>
module attributes {stable_mosaic.version = 11 : i64} {
  func.func @_conv3x3_kernel(%arg0: i32, %arg1: memref<1x4x512xf32, #tpu.memory_space<vmem>>, %arg2: memref<9x512xf32, #tpu.memory_space<vmem>>, %arg3: memref<4x36xf32, #tpu.memory_space<vmem>>, %arg4: memref<4x1xf32, #tpu.memory_space<vmem>>, %arg5: memref<1x4x512xf32, #tpu.memory_space<vmem>>) attributes {dimension_semantics = [#tpu.dimension_semantics<arbitrary>], iteration_bounds = array<i64: 1>, scalar_prefetch = 0 : i64, scratch_operands = 0 : i64, tpu.core_type = #tpu.core_type<tc>, window_params = [{pipeline_mode = #tpu.pipeline_mode<synchronous>, transform_indices = @transform_0, window_bounds = array<i64: 1, 4, 512>}, {pipeline_mode = #tpu.pipeline_mode<synchronous>, transform_indices = @transform_1, window_bounds = array<i64: 9, 512>}, {pipeline_mode = #tpu.pipeline_mode<synchronous>, transform_indices = @transform_2, window_bounds = array<i64: 4, 36>}, {pipeline_mode = #tpu.pipeline_mode<synchronous>, transform_indices = @transform_3, window_bounds = array<i64: 4, 1>}, {pipeline_mode = #tpu.pipeline_mode<synchronous>, transform_indices = @transform_4, window_bounds = array<i64: 1, 4, 512>}]} {
    %c0 = arith.constant 0 : index
    %c0_0 = arith.constant 0 : index
    %c0_1 = arith.constant 0 : index
    %0 = vector.load %arg1[%c0, %c0_0, %c0_1] : memref<1x4x512xf32, #tpu.memory_space<vmem>>, vector<1x4x512xf32>
    %1 = vector.shape_cast %0 : vector<1x4x512xf32> to vector<4x512xf32>
    %c17_i32 = arith.constant 17 : i32
    %2 = tpu.dynamic_rotate %1 by %c17_i32 dim 1 : vector<4x512xf32>, i32 -> vector<4x512xf32>
    %c0_2 = arith.constant 0 : index
    %c0_3 = arith.constant 0 : index
    %3 = vector.load %arg2[%c0_2, %c0_3] : memref<9x512xf32, #tpu.memory_space<vmem>>, vector<1x512xf32>
    %4 = vector.broadcast %3 : vector<1x512xf32> to vector<4x512xf32>
    %5 = arith.mulf %2, %4 : vector<4x512xf32>
    %c16_i32 = arith.constant 16 : i32
    %6 = tpu.dynamic_rotate %1 by %c16_i32 dim 1 : vector<4x512xf32>, i32 -> vector<4x512xf32>
    %c1 = arith.constant 1 : index
    %c0_4 = arith.constant 0 : index
    %7 = vector.load %arg2[%c1, %c0_4] : memref<9x512xf32, #tpu.memory_space<vmem>>, vector<1x512xf32>
    %8 = vector.broadcast %7 : vector<1x512xf32> to vector<4x512xf32>
    %9 = arith.mulf %6, %8 : vector<4x512xf32>
    %c15_i32 = arith.constant 15 : i32
    %10 = tpu.dynamic_rotate %1 by %c15_i32 dim 1 : vector<4x512xf32>, i32 -> vector<4x512xf32>
    %c2 = arith.constant 2 : index
    %c0_5 = arith.constant 0 : index
    %11 = vector.load %arg2[%c2, %c0_5] : memref<9x512xf32, #tpu.memory_space<vmem>>, vector<1x512xf32>
    %12 = vector.broadcast %11 : vector<1x512xf32> to vector<4x512xf32>
    %13 = arith.mulf %10, %12 : vector<4x512xf32>
    %c1_i32 = arith.constant 1 : i32
    %14 = tpu.dynamic_rotate %1 by %c1_i32 dim 1 : vector<4x512xf32>, i32 -> vector<4x512xf32>
    %c3 = arith.constant 3 : index
    %c0_6 = arith.constant 0 : index
    %15 = vector.load %arg2[%c3, %c0_6] : memref<9x512xf32, #tpu.memory_space<vmem>>, vector<1x512xf32>
    %16 = vector.broadcast %15 : vector<1x512xf32> to vector<4x512xf32>
    %17 = arith.mulf %14, %16 : vector<4x512xf32>
    %c4 = arith.constant 4 : index
    %c0_7 = arith.constant 0 : index
    %18 = vector.load %arg2[%c4, %c0_7] : memref<9x512xf32, #tpu.memory_space<vmem>>, vector<1x512xf32>
    %19 = vector.broadcast %18 : vector<1x512xf32> to vector<4x512xf32>
    %20 = arith.mulf %1, %19 : vector<4x512xf32>
    %c511_i32 = arith.constant 511 : i32
    %21 = tpu.dynamic_rotate %1 by %c511_i32 dim 1 : vector<4x512xf32>, i32 -> vector<4x512xf32>
    %c5 = arith.constant 5 : index
    %c0_8 = arith.constant 0 : index
    %22 = vector.load %arg2[%c5, %c0_8] : memref<9x512xf32, #tpu.memory_space<vmem>>, vector<1x512xf32>
    %23 = vector.broadcast %22 : vector<1x512xf32> to vector<4x512xf32>
    %24 = arith.mulf %21, %23 : vector<4x512xf32>
    %c497_i32 = arith.constant 497 : i32
    %25 = tpu.dynamic_rotate %1 by %c497_i32 dim 1 : vector<4x512xf32>, i32 -> vector<4x512xf32>
    %c6 = arith.constant 6 : index
    %c0_9 = arith.constant 0 : index
    %26 = vector.load %arg2[%c6, %c0_9] : memref<9x512xf32, #tpu.memory_space<vmem>>, vector<1x512xf32>
    %27 = vector.broadcast %26 : vector<1x512xf32> to vector<4x512xf32>
    %28 = arith.mulf %25, %27 : vector<4x512xf32>
    %c496_i32 = arith.constant 496 : i32
    %29 = tpu.dynamic_rotate %1 by %c496_i32 dim 1 : vector<4x512xf32>, i32 -> vector<4x512xf32>
    %c7 = arith.constant 7 : index
    %c0_10 = arith.constant 0 : index
    %30 = vector.load %arg2[%c7, %c0_10] : memref<9x512xf32, #tpu.memory_space<vmem>>, vector<1x512xf32>
    %31 = vector.broadcast %30 : vector<1x512xf32> to vector<4x512xf32>
    %32 = arith.mulf %29, %31 : vector<4x512xf32>
    %c495_i32 = arith.constant 495 : i32
    %33 = tpu.dynamic_rotate %1 by %c495_i32 dim 1 : vector<4x512xf32>, i32 -> vector<4x512xf32>
    %c8 = arith.constant 8 : index
    %c0_11 = arith.constant 0 : index
    %34 = vector.load %arg2[%c8, %c0_11] : memref<9x512xf32, #tpu.memory_space<vmem>>, vector<1x512xf32>
    %35 = vector.broadcast %34 : vector<1x512xf32> to vector<4x512xf32>
    %36 = arith.mulf %33, %35 : vector<4x512xf32>
    %37 = tpu.concatenate %5, %9, %13, %17, %20, %24, %28, %32, %36 in 0 : vector<4x512xf32>, vector<4x512xf32>, vector<4x512xf32>, vector<4x512xf32>, vector<4x512xf32>, vector<4x512xf32>, vector<4x512xf32>, vector<4x512xf32>, vector<4x512xf32> -> vector<36x512xf32>
    %c0_12 = arith.constant 0 : index
    %c0_13 = arith.constant 0 : index
    %38 = vector.load %arg3[%c0_12, %c0_13] : memref<4x36xf32, #tpu.memory_space<vmem>>, vector<4x36xf32>
    %cst = arith.constant dense<0.000000e+00> : vector<4x512xf32>
    %39 = tpu.matmul %38, %37, %cst {dimension_numbers = #tpu.dot_dimension_numbers<[1], [0], [0], [1], [0, 0, 1, 1], [], []>} : vector<4x36xf32>, vector<36x512xf32>, vector<4x512xf32> -> vector<4x512xf32>
    %c0_14 = arith.constant 0 : index
    %c0_15 = arith.constant 0 : index
    %40 = vector.load %arg4[%c0_14, %c0_15] : memref<4x1xf32, #tpu.memory_space<vmem>>, vector<4x1xf32>
    %41 = vector.broadcast %40 : vector<4x1xf32> to vector<4x512xf32>
    %42 = arith.addf %39, %41 : vector<4x512xf32>
    %c0_16 = arith.constant 0 : index
    %c0_17 = arith.constant 0 : index
    %c0_18 = arith.constant 0 : index
    %43 = vector.load %arg5[%c0_16, %c0_17, %c0_18] : memref<1x4x512xf32, #tpu.memory_space<vmem>>, vector<1x4x512xf32>
    %44 = vector.shape_cast %43 : vector<1x4x512xf32> to vector<4x512xf32>
    %45 = vector.shape_cast %42 : vector<4x512xf32> to vector<1x4x512xf32>
    tpu.vector_store %arg5[%c0_16, %c0_17, %c0_18], %45 {strides = array<i32>} : memref<1x4x512xf32, #tpu.memory_space<vmem>>, vector<1x4x512xf32>,
    return
  }
  func.func @transform_0(%arg0: i32) -> (i32, i32, i32) {
    %c0_i32 = arith.constant 0 : i32
    %c0_i32_0 = arith.constant 0 : i32
    %c0_i32_1 = arith.constant 0 : i32
    %c0_i32_2 = arith.constant 0 : i32
    return %c0_i32, %c0_i32_0, %c0_i32_1 : i32, i32, i32
  }
  func.func @transform_1(%arg0: i32) -> (i32, i32) {
    %c0_i32 = arith.constant 0 : i32
    %c0_i32_0 = arith.constant 0 : i32
    %c0_i32_1 = arith.constant 0 : i32
    return %c0_i32, %c0_i32_0 : i32, i32
  }
  func.func @transform_2(%arg0: i32) -> (i32, i32) {
    %c0_i32 = arith.constant 0 : i32
    %c0_i32_0 = arith.constant 0 : i32
    %c0_i32_1 = arith.constant 0 : i32
    return %c0_i32, %c0_i32_0 : i32, i32
  }
  func.func @transform_3(%arg0: i32) -> (i32, i32) {
    %c0_i32 = arith.constant 0 : i32
    %c0_i32_0 = arith.constant 0 : i32
    %c0_i32_1 = arith.constant 0 : i32
    return %c0_i32, %c0_i32_0 : i32, i32
  }
  func.func @transform_4(%arg0: i32) -> (i32, i32, i32) {
    %c0_i32 = arith.constant 0 : i32
    %c0_i32_0 = arith.constant 0 : i32
    %c0_i32_1 = arith.constant 0 : i32
    %c0_i32_2 = arith.constant 0 : i32
    return %c0_i32, %c0_i32_0, %c0_i32_1 : i32, i32, i32
  }
}

</mosaic_0001>

<bundles_post_ra>
// kernel: tpu_custom_call.1
= control target key start
LH: loop header
LB: loop body
LE: loop exit
PB: predicated region body
PF: predicated region fallthrough
CT: control target
= control target key end

     0   :  { %9 = vsyncpa [#allocation3], 0  ;;  %s1030_s0 = inlined_call_operand.hbm [shape: f32[1,4,512], index: 0, kind: input, shape index: {}]   ;;  %s1031_s1 = inlined_call_operand.hbm [shape: f32[9,512], index: 1, kind: input, shape index: {}]   ;;  %s1032_s2 = inlined_call_operand.vmem [shape: f32[4,36], index: 2, kind: input, shape index: {}]   ;;  %s1033_s3 = inlined_call_operand.vmem [shape: f32[4,1], index: 3, kind: input, shape index: {}]   ;;  %s1034_s4 = inlined_call_operand.hbm [shape: f32[1,4,512], index: 4, kind: output, shape index: {}]  }
   0x1   :  { %10 = vsyncpa [#allocation6], 0 }
   0x2   :  { %11 = vsyncpa [#allocation4], 0  ;;  %s772_s15 = smov [#allocation2]   ;;  %s773_s17 = smov [#allocation5]  }
   0x3   :  { %s18_s16 = sshll.u32 %s772_s15, 4  ;;  %s27_s18 = sshll.u32 %s773_s17, 4  ;;  %s19_s16 = int_to_ptr.vmem [resolvable:$true] %s18_s16  ;;  %s812_s18 = int_to_ptr.vmem [resolvable:$true] %s27_s18 }
   0x4   :  { %s700_s21 = scalar_lea.hbm %s1030_s0, 256 }
   0x5   :  { %p701_p0 = scmp.ne.s32.totalorder %s1030_s0, %s700_s21  ;;  %p704_p1 = scmp.lt.u32.totalorder %s700_s21, %s1030_s0 }
   0x7   :  { %p706_p2 = pnand %p704_p1, %p701_p0 }
   0x9   :  { %709 = shalt.err (!%p706_p2)
}
   0xa   :  { %s710_s26 = scalar_lea.vmem %s19_s16, 256  ;;  %p715_p4 = scmp.lt.s32.totalorder %s19_s16, %s19_s16 }
   0xb   :  { %p711_p3 = scmp.ne.s32.totalorder %s19_s16, %s710_s26  ;;  %p716_p5 = scmp.lt.s32.totalorder %s710_s26, %s710_s26 }
   0xd   :  { %p717_p6 = por %p716_p5, %p715_p4 }
   0xf   :  { %p718_p7 = pnand %p717_p6, %p711_p3 }
  0x11   :  { %721 = shalt.err (!%p718_p7)
}
  0x12   :  { %21 = dma.hbm_to_vmem [thread:$0]  %s1030_s0, 256, %s19_s16, [#allocation3]  }
  0x13   :  { %s722_s5 = scalar_lea.hbm %s1031_s1, 1024 }
  0x14   :  { %p723_p8 = scmp.ne.s32.totalorder %s1031_s1, %s722_s5  ;;  %p726_p9 = scmp.lt.u32.totalorder %s722_s5, %s1031_s1 }
  0x16   :  { %p728_p10 = pnand %p726_p9, %p723_p8 }
  0x18   :  { %731 = shalt.err (!%p728_p10)
}
  0x19   :  { %s732_s10 = scalar_lea.vmem %s812_s18, 1024  ;;  %p737_p12 = scmp.lt.s32.totalorder %s812_s18, %s812_s18 }
  0x1a   :  { %p733_p11 = scmp.ne.s32.totalorder %s812_s18, %s732_s10  ;;  %p738_p13 = scmp.lt.s32.totalorder %s732_s10, %s732_s10 }
  0x1c   :  { %p739_p0 = por %p738_p13, %p737_p12 }
  0x1e   :  { %p740_p1 = pnand %p739_p0, %p733_p11 }
  0x20   :  { %743 = shalt.err (!%p740_p1)
}
  0x21   :  { %s774_s0 = smov 512   ;;  %s775_s11 = smov 32  }
  0x22   :  { %33 = dma.hbm_to_vmem [thread:$0]  %s1031_s1, 1024, %s812_s18, [#allocation6], %s774_s0, %s774_s0, %s775_s11  }
  0x23   :  { %766 = dma.done.wait [#allocation3], 256  }
  0x24   :  { %767 = vsyncadd [#allocation3], 4294967040 }
  0x25   :  { %768 = dma.done.wait [#allocation6], 1024  }
  0x26   :  { %769 = vsyncadd [#allocation6], 4294966272  ;;  %v843_v0 = vld [vmem:[#allocation2 + $0x8] sm:$0xff]  ;;  %v845_v1 = vld [vmem:[#allocation2] sm:$0xff]  ;;  %s776_s14 = smov 16   ;;  %s777_s15 = smov 1   ;;  %v60_v9 = vlaneseq }
  0x27   :  { %97 = vrot.lane.b32.xlu1 %v843_v0, %s776_s14  ;;  %93 = vrot.lane.b32.xlu0 %v845_v1, %s776_s14  ;;  %v49_v2 = vcombine.high %v843_v0, %v843_v0  ;;  %v48_v3 = vcombine.high %v845_v1, %v845_v1  ;;  %s778_s1 = smov 17   ;;  %s779_s16 = smov 15   ;;  %v783_v4 = vmov 0.0   ;;  %v784_v5 = vmov 0   ;;  %v470_v6 = vld [vmem:[%s1033_s3] sm:$0xf] }
  0x28   :  { %s780_s17 = smov 127   ;;  %s781_s18 = smov 112   ;;  %556 = vmatprep.mubr.f32.mxu0 %v783_v4  ;;  %627 = vmatprep.mubr.f32.mxu1 %v783_v4  ;;  %v70_v12 = vshrl.u32 %v60_v9, 7  ;;  %v870_v15 = vand.u32 127, %v60_v9  ;;  %vm452_vm3 = vcmask 1043456   ;;  %vm476_vm9 = vcmask 293888  }
  0x29   :  { %s782_s19 = smov 113   ;;  %697 = vset.pattern.permute.xlu0 %v784_v5  ;;  %s785_s20 = smov 111   ;;  %v107_v18 = vld [vmem:[#allocation5 + $0x1] ss:$8 sm:$0xf] }
  0x2a   :  { %v872_v16 = vsub.s32 0, %v70_v12  ;;  %v874_v17 = vsub.s32 3, %v70_v12  ;;  %v876_v19 = vsub.s32 1, %v70_v12  ;;  %v878_v20 = vsub.s32 2, %v70_v12  ;;  %s786_s24 = smov [#allocation7]  }
  0x2b   :  { %99 = vrot.lane.b32.xlu1 %v49_v2, %s776_s14  ;;  %173 = vrot.lane.b32.xlu0 %v845_v1, %s777_s15  ;;  %v187_v23 = vld [vmem:[#allocation5 + $0x3] ss:$8 sm:$0xf]  ;;  %v67_v24 = vld [vmem:[#allocation5] ss:$8 sm:$0xf] }
  0x2c   :  { %vm101_vm0 = vcmp.lt.s32.totalorder %v870_v15, 16  ;;  %v112_v25 = vrot.slane %v107_v18, %v872_v16  ;;  %v124_v26 = vrot.slane %v107_v18, %v874_v17  ;;  %vm181_vm1 = vcmp.lt.s32.totalorder %v870_v15, 1  ;;  %v147_v36 = vld [vmem:[#allocation5 + $0x2] ss:$8 sm:$0xf] }
  0x2d   :  { %v196_v27 = vrot.slane %v187_v23, %v876_v19  ;;  %v116_v28 = vrot.slane %v107_v18, %v876_v19  ;;  %v120_v29 = vrot.slane %v107_v18, %v878_v20  ;;  %v192_v30 = vrot.slane %v187_v23, %v872_v16 }
  0x2e   :  { %v200_v33 = vrot.slane %v187_v23, %v878_v20  ;;  %v204_v34 = vrot.slane %v187_v23, %v874_v17  ;;  %vm62_vm2 = vcmp.lt.s32.totalorder %v870_v15, 17  ;;  %v76_v35 = vrot.slane %v67_v24, %v876_v19 }
  0x2f   :  { %175 = vrot.lane.b32.xlu1 %v48_v3, %s777_s15  ;;  %95 = vrot.lane.b32.xlu0 %v48_v3, %s776_s14  ;;  %v72_v39 = vrot.slane %v67_v24, %v872_v16  ;;  %v80_v42 = vrot.slane %v67_v24, %v878_v20  ;;  %v84_v43 = vrot.slane %v67_v24, %v874_v17  ;;  %vm141_vm4 = vcmp.lt.s32.totalorder %v870_v15, 15 }
  0x30   :  { %v156_v48 = vrot.slane %v147_v36, %v876_v19  ;;  %v152_v55 = vrot.slane %v147_v36, %v872_v16  ;;  %v160_v56 = vrot.slane %v147_v36, %v878_v20  ;;  %v164_v60 = vrot.slane %v147_v36, %v874_v17 }
  0x31   :  { %vm246_vm5 = vcmp.lt.s32.totalorder %v870_v15, 127  ;;  %vm326_vm6 = vcmp.lt.s32.totalorder %v870_v15, 112  ;;  %vm286_vm7 = vcmp.lt.s32.totalorder %v870_v15, 113  ;;  %vm366_vm8 = vcmp.lt.s32.totalorder %v870_v15, 111 }
  0x33   :  { %179 = vrot.lane.b32.xlu1 %v49_v2, %s777_s15  ;;  %177 = vrot.lane.b32.xlu0 %v843_v0, %s777_s15 }
  0x37   :  { %54 = vrot.lane.b32.xlu1 %v48_v3, %s778_s1  ;;  %52 = vrot.lane.b32.xlu0 %v845_v1, %s778_s1 }
  0x3b   :  { %58 = vrot.lane.b32.xlu1 %v49_v2, %s778_s1  ;;  %56 = vrot.lane.b32.xlu0 %v843_v0, %s778_s1 }
  0x3f   :  { %135 = vrot.lane.b32.xlu1 %v48_v3, %s779_s16  ;;  %133 = vrot.lane.b32.xlu0 %v845_v1, %s779_s16 }
  0x43   :  { %139 = vrot.lane.b32.xlu1 %v49_v2, %s779_s16  ;;  %137 = vrot.lane.b32.xlu0 %v843_v0, %s779_s16 }
  0x47   :  { %240 = vrot.lane.b32.xlu1 %v48_v3, %s780_s17  ;;  %238 = vrot.lane.b32.xlu0 %v845_v1, %s780_s17 }
  0x4b   :  { %244 = vrot.lane.b32.xlu1 %v49_v2, %s780_s17  ;;  %242 = vrot.lane.b32.xlu0 %v843_v0, %s780_s17 }
  0x4f   :  { %320 = vrot.lane.b32.xlu1 %v48_v3, %s781_s18  ;;  %318 = vrot.lane.b32.xlu0 %v845_v1, %s781_s18 }
  0x53   :  { %324 = vrot.lane.b32.xlu1 %v49_v2, %s781_s18  ;;  %322 = vrot.lane.b32.xlu0 %v843_v0, %s781_s18 }
  0x57   :  { %280 = vrot.lane.b32.xlu1 %v48_v3, %s782_s19  ;;  %278 = vrot.lane.b32.xlu0 %v845_v1, %s782_s19 }
  0x5b   :  { %284 = vrot.lane.b32.xlu1 %v49_v2, %s782_s19  ;;  %282 = vrot.lane.b32.xlu0 %v843_v0, %s782_s19 }
  0x5f   :  { %360 = vrot.lane.b32.xlu1 %v48_v3, %s785_s20  ;;  %358 = vrot.lane.b32.xlu0 %v845_v1, %s785_s20 }
  0x63   :  { %364 = vrot.lane.b32.xlu1 %v49_v2, %s785_s20  ;;  %362 = vrot.lane.b32.xlu0 %v843_v0, %s785_s20 }
  0x67   :  { %473 = vperm.xlu0 %697, %v470_v6  }
  0x99   :  { %v98_v7 = vpop.permute.xlu1 %97  ;;  %v94_v8 = vpop.permute.xlu0 %93 }
  0x9d   :  { %v100_v10 = vpop.permute.xlu1 %99  ;;  %v174_v11 = vpop.permute.xlu0 %173 }
  0x9e   :  { %v102_v37 = vsel %vm101_vm0, %v98_v7, %v100_v10  ;;  %v105_v38 = vsel %vm101_vm0, %v100_v10, %v94_v8 }
  0x9f   :  { %v129_v49 = vmul.f32 %v112_v25, %v105_v38  ;;  %v132_v50 = vmul.f32 %v124_v26, %v102_v37 }
  0xa1   :  { %v176_v13 = vpop.permute.xlu1 %175  ;;  %v96_v14 = vpop.permute.xlu0 %95  ;;  %v402_v5 = vrot.slane %v129_v49, 4  ;;  %v405_v6 = vrot.slane %v132_v50, 4 }
  0xa2   :  { %v184_v40 = vsel %vm181_vm1, %v174_v11, %v176_v13  ;;  %v104_v41 = vsel %vm101_vm0, %v94_v8, %v96_v14  ;;  %v103_v44 = vsel %vm101_vm0, %v96_v14, %v98_v7 }
  0xa3   :  { %v210_v53 = vmul.f32 %v196_v27, %v184_v40  ;;  %v130_v54 = vmul.f32 %v116_v28, %v104_v41  ;;  %v131_v57 = vmul.f32 %v120_v29, %v103_v44  ;;  %v214_v44 = vld [vmem:[#allocation5 + $0x4] ss:$8 sm:$0xf] }
  0xa4   :  { %v223_v49 = vrot.slane %v214_v44, %v876_v19 }
  0xa5   :  { %v180_v21 = vpop.permute.xlu1 %179  ;;  %v178_v22 = vpop.permute.xlu0 %177  ;;  %v415_v9 = vrot.slane %v210_v53, 4  ;;  %v403_v10 = vrot.slane %v130_v54, 4  ;;  %v231_v53 = vrot.slane %v214_v44, %v874_v17  ;;  %v252_v54 = vld [vmem:[#allocation5 + $0x5] ss:$8 sm:$0xf] }
  0xa6   :  { %v185_v45 = vsel %vm181_vm1, %v180_v21, %v174_v11  ;;  %v183_v51 = vsel %vm181_vm1, %v176_v13, %v178_v22  ;;  %v182_v59 = vsel %vm181_vm1, %v178_v22, %v180_v21  ;;  %v404_v13 = vrot.slane %v131_v57, 4  ;;  %v332_v57 = vld [vmem:[#allocation5 + $0x7] ss:$8 sm:$0xf] }
  0xa7   :  { %v209_v58 = vmul.f32 %v192_v30, %v185_v45  ;;  %v211_v61 = vmul.f32 %v200_v33, %v183_v51  ;;  %v212_v11 = vmul.f32 %v204_v34, %v182_v59  ;;  %v257_v59 = vrot.slane %v252_v54, %v872_v16 }
  0xa9   :  { %v55_v31 = vpop.permute.xlu1 %54  ;;  %v53_v32 = vpop.permute.xlu0 %52  ;;  %v414_v14 = vrot.slane %v209_v58, 4  ;;  %v416_v22 = vrot.slane %v211_v61, 4 }
  0xaa   :  { %v65_v52 = vsel %vm62_vm2, %v53_v32, %v55_v31 }
  0xab   :  { %v90_v62 = vmul.f32 %v76_v35, %v65_v52  ;;  %v227_v52 = vrot.slane %v214_v44, %v878_v20 }
  0xad   :  { %v59_v46 = vpop.permute.xlu1 %58  ;;  %v57_v47 = vpop.permute.xlu0 %56  ;;  %v454_v26 = vsel %vm452_vm3, %v90_v62, %v403_v10  ;;  %v233_v61 = vcombine.low %v227_v52, %v231_v53  ;;  %v261_v62 = vrot.slane %v252_v54, %v876_v19  ;;  %v292_v10 = vld [vmem:[#allocation5 + $0x6] ss:$8 sm:$0xf] }
  0xae   :  { %v66_v63 = vsel %vm62_vm2, %v59_v46, %v53_v32  ;;  %v63_v2 = vsel %vm62_vm2, %v57_v47, %v59_v46  ;;  %v64_v7 = vsel %vm62_vm2, %v55_v31, %v57_v47  ;;  %v417_v32 = vrot.slane %v212_v11, 4 }
  0xaf   :  { %v89_v18 = vmul.f32 %v72_v39, %v66_v63  ;;  %v92_v21 = vmul.f32 %v84_v43, %v63_v2  ;;  %v91_v23 = vmul.f32 %v80_v42, %v64_v7  ;;  %v265_v63 = vrot.slane %v252_v54, %v878_v20 }
  0xb0   :  { %v337_v2 = vrot.slane %v332_v57, %v872_v16 }
  0xb1   :  { %v136_v3 = vpop.permute.xlu1 %135  ;;  %v134_v4 = vpop.permute.xlu0 %133  ;;  %v453_v36 = vsel %vm452_vm3, %v89_v18, %v402_v5  ;;  %v456_v37 = vsel %vm452_vm3, %v92_v21, %v405_v6  ;;  %v455_v42 = vsel %vm452_vm3, %v91_v23, %v404_v13  ;;  %v349_v6 = vrot.slane %v332_v57, %v874_v17 }
  0xb2   :  { %v144_v8 = vsel %vm141_vm4, %v134_v4, %v136_v3  ;;  %v237_v21 = vmul.f32 %v233_v61, %v843_v0 }
  0xb3   :  { %v170_v12 = vmul.f32 %v156_v48, %v144_v8  ;;  %v219_v48 = vrot.slane %v214_v44, %v872_v16  ;;  %v341_v8 = vrot.slane %v332_v57, %v876_v19 }
  0xb5   :  { %v140_v24 = vpop.permute.xlu1 %139  ;;  %v138_v25 = vpop.permute.xlu0 %137  ;;  %v458_v27 = vsel %vm452_vm3, %v170_v12, %v415_v9 }
  0xb6   :  { %v145_v28 = vsel %vm141_vm4, %v140_v24, %v134_v4  ;;  %v142_v29 = vsel %vm141_vm4, %v138_v25, %v140_v24  ;;  %v143_v30 = vsel %vm141_vm4, %v136_v3, %v138_v25  ;;  %v666_v31 = vpack.c.bf16 %v458_v27, %v454_v26 }
  0xb7   :  { %v169_v33 = vmul.f32 %v152_v55, %v145_v28  ;;  %v171_v34 = vmul.f32 %v160_v56, %v143_v30  ;;  %v172_v35 = vmul.f32 %v164_v60, %v142_v29  ;;  %v232_v55 = vcombine.low %v219_v48, %v223_v49 }
  0xb8   :  { %667 = vmatprep.subr.bf16.mxu0 %v666_v31  ;;  %v269_v60 = vrot.slane %v252_v54, %v874_v17  ;;  %v297_v25 = vrot.slane %v292_v10, %v872_v16 }
  0xb9   :  { %v241_v38 = vpop.permute.xlu1 %240  ;;  %v239_v39 = vpop.permute.xlu0 %238  ;;  %v457_v40 = vsel %vm452_vm3, %v169_v33, %v414_v14  ;;  %v460_v41 = vsel %vm452_vm3, %v172_v35, %v417_v32  ;;  %v459_v43 = vsel %vm452_vm3, %v171_v34, %v416_v22  ;;  %v952_v3 = vmul.f32 %v232_v55, %v845_v1 }
  0xba   :  { %v668_v45 = vpack.c.bf16 %v457_v40, %v453_v36  ;;  %v674_v46 = vpack.c.bf16 %v460_v41, %v456_v37  ;;  %v676_v47 = vpack.c.bf16 %v459_v43, %v455_v42  ;;  %v249_v11 = vsel %vm246_vm5, %v239_v39, %v241_v38 }
  0xbb   :  { %v345_v14 = vrot.slane %v332_v57, %v878_v20  ;;  %v274_v26 = vmul.f32 %v257_v59, %v249_v11  ;;  %v424_v0 = vcombine.high %v952_v3, %v952_v3  ;;  %v309_v35 = vrot.slane %v292_v10, %v874_v17 }
  0xbc   :  { %669 = vmatpush1.bf16.msra.mxu0 %v668_v45  ;;  %675 = vmatprep.subr.bf16.mxu1 %v674_v46  ;;  %v301_v36 = vrot.slane %v292_v10, %v876_v19  ;;  %v305_v37 = vrot.slane %v292_v10, %v878_v20  ;;  %v425_v41 = vcombine.high %v237_v21, %v237_v21 }
  0xbd   :  { %v245_v50 = vpop.permute.xlu1 %244  ;;  %677 = vmatpush1.bf16.msra.mxu1 %v676_v47  ;;  %v243_v51 = vpop.permute.xlu0 %242  ;;  %v432_v42 = vrot.slane %v274_v26, 4 }
  0xbe   :  { %v250_v4 = vsel %vm246_vm5, %v245_v50, %v239_v39  ;;  %v248_v5 = vsel %vm246_vm5, %v241_v38, %v243_v51  ;;  %v247_v1 = vsel %vm246_vm5, %v243_v51, %v245_v50 }
  0xbf   :  { %v277_v22 = vmul.f32 %v269_v60, %v250_v4  ;;  %v275_v23 = vmul.f32 %v261_v62, %v248_v5  ;;  %v276_v27 = vmul.f32 %v265_v63, %v247_v1  ;;  %v372_v60 = vld [vmem:[#allocation5 + $0x20] ss:$8 sm:$0xf] }
  0xc0   :  { %v381_v11 = vrot.slane %v372_v60, %v876_v19  ;;  %v385_v1 = vrot.slane %v372_v60, %v878_v20 }
  0xc1   :  { %v321_v56 = vpop.permute.xlu1 %320  ;;  %v319_v58 = vpop.permute.xlu0 %318  ;;  %v435_v38 = vrot.slane %v277_v22, 4  ;;  %v433_v39 = vrot.slane %v275_v23, 4  ;;  %v434_v43 = vrot.slane %v276_v27, 4  ;;  %v469_v23 = vld [vmem:[%s1032_s2] sm:$0xf]  ;;  %s650_s2 = sshll.u32 %s786_s24, 4  ;;  %s651_s2 = int_to_ptr.vmem [resolvable:$true] %s650_s2 }
  0xc2   :  { %v329_v12 = vsel %vm326_vm6, %v319_v58, %v321_v56  ;;  %s744_s25 = scalar_lea.vmem %s651_s2, 256  ;;  %p749_p3 = scmp.lt.s32.totalorder %s651_s2, %s651_s2 }
  0xc3   :  { %v354_v28 = vmul.f32 %v337_v2, %v329_v12  ;;  %v464_v57 = vsel %vm452_vm3, %v425_v41, %v435_v38  ;;  %v463_v2 = vsel %vm452_vm3, %v237_v21, %v434_v43  ;;  %v377_v12 = vrot.slane %v372_v60, %v872_v16  ;;  %p745_p2 = scmp.ne.s32.totalorder %s651_s2, %s744_s25  ;;  %p750_p4 = scmp.lt.s32.totalorder %s744_s25, %s744_s25 }
  0xc5   :  { %v325_v7 = vpop.permute.xlu1 %324  ;;  %v323_v9 = vpop.permute.xlu0 %322  ;;  %v444_v44 = vrot.slane %v354_v28, 4  ;;  %p751_p5 = por %p750_p4, %p749_p3 }
  0xc6   :  { %v330_v13 = vsel %vm326_vm6, %v325_v7, %v319_v58  ;;  %v328_v18 = vsel %vm326_vm6, %v321_v56, %v323_v9  ;;  %v327_v24 = vsel %vm326_vm6, %v323_v9, %v325_v7  ;;  %v462_v56 = vsel %vm452_vm3, %v424_v0, %v433_v39 }
  0xc7   :  { %v357_v29 = vmul.f32 %v349_v6, %v330_v13  ;;  %v355_v32 = vmul.f32 %v341_v8, %v328_v18  ;;  %v356_v34 = vmul.f32 %v345_v14, %v327_v24  ;;  %v461_v7 = vsel %vm452_vm3, %v952_v3, %v432_v42  ;;  %p752_p6 = pnand %p751_p5, %p745_p2 }
  0xc8   :  { %v389_v9 = vrot.slane %v372_v60, %v874_v17 }
  0xc9   :  { %v281_v30 = vpop.permute.xlu1 %280  ;;  %v279_v31 = vpop.permute.xlu0 %278  ;;  %v447_v45 = vrot.slane %v357_v29, 4  ;;  %v445_v48 = vrot.slane %v355_v32, 4  ;;  %v446_v52 = vrot.slane %v356_v34, 4 }
  0xca   :  { %v289_v33 = vsel %vm286_vm7, %v279_v31, %v281_v30 }
  0xcb   :  { %v314_v40 = vmul.f32 %v297_v25, %v289_v33 }
  0xcd   :  { %v285_v46 = vpop.permute.xlu1 %284  ;;  %v283_v47 = vpop.permute.xlu0 %282  ;;  %v465_v58 = vsel %vm452_vm3, %v314_v40, %v444_v44 }
  0xce   :  { %v290_v49 = vsel %vm286_vm7, %v285_v46, %v279_v31  ;;  %v287_v50 = vsel %vm286_vm7, %v283_v47, %v285_v46  ;;  %v288_v51 = vsel %vm286_vm7, %v281_v30, %v283_v47  ;;  %v672_v10 = vpack.c.bf16 %v465_v58, %v461_v7 }
  0xcf   :  { %v317_v53 = vmul.f32 %v309_v35, %v290_v49  ;;  %v315_v54 = vmul.f32 %v301_v36, %v288_v51  ;;  %v316_v55 = vmul.f32 %v305_v37, %v287_v50 }
  0xd1   :  { %v361_v59 = vpop.permute.xlu1 %360  ;;  %v359_v61 = vpop.permute.xlu0 %358  ;;  %v466_v62 = vsel %vm452_vm3, %v315_v54, %v445_v48  ;;  %v468_v63 = vsel %vm452_vm3, %v317_v53, %v447_v45  ;;  %v467_v4 = vsel %vm452_vm3, %v316_v55, %v446_v52 }
  0xd2   :  { %v670_v5 = vpack.c.bf16 %v466_v62, %v462_v56  ;;  %v678_v6 = vpack.c.bf16 %v468_v63, %v464_v57  ;;  %v680_v8 = vpack.c.bf16 %v467_v4, %v463_v2  ;;  %v369_v13 = vsel %vm366_vm8, %v359_v61, %v361_v59 }
  0xd3   :  { %v394_v22 = vmul.f32 %v377_v12, %v369_v13 }
  0xd4   :  { %671 = vmatprep.subr.bf16.mxu0 %v670_v5  ;;  %679 = vmatprep.subr.bf16.mxu1 %v678_v6 }
  0xd5   :  { %v365_v14 = vpop.permute.xlu1 %364  ;;  %673 = vmatpush1.bf16.msra.mxu0 %v672_v10  ;;  %681 = vmatpush1.bf16.msra.mxu1 %v680_v8  ;;  %v363_v18 = vpop.permute.xlu0 %362 }
  0xd6   :  { %v370_v3 = vsel %vm366_vm8, %v365_v14, %v359_v61  ;;  %v367_v17 = vsel %vm366_vm8, %v363_v18, %v365_v14  ;;  %v368_v19 = vsel %vm366_vm8, %v361_v59, %v363_v18 }
  0xd7   :  { %v397_v20 = vmul.f32 %v389_v9, %v370_v3  ;;  %v395_v16 = vmul.f32 %v381_v11, %v368_v19  ;;  %v396_v21 = vmul.f32 %v385_v1, %v367_v17 }
  0xd9   :  { %660 = vmatprep.subr.msk.mxu0 %vm452_vm3, %v395_v16  ;;  %663 = vmatprep.subr.msk.mxu1 %vm452_vm3, %v397_v20 }
  0xda   :  { %661 = vmatpush1.msk.msra.mxu0 %vm452_vm3, %v394_v22  ;;  %664 = vmatpush1.msk.msra.mxu1 %vm452_vm3, %v396_v21 }
  0xdb   :  { %662 = vmatmul.mubr.msk.f32.vlgmr.msra.gmra.mrb[0].mxu0 %vm476_vm9, %v469_v23  ;;  %665 = vmatmul.mubr.msk.f32.vlgmr.msra.gmra.mrb[0].mxu1 %vm476_vm9, %v469_v23 }
  0xe6   :  { %v474_v15 = vpop.permute.xlu0 %473 }
 0x1ae   :  { %v558_v24 = vpop.f32.mrb[0].mxu0  ;;  %v629_v25 = vpop.f32.mrb[0].mxu1 }
 0x1af   :  { %v559_v26 = vadd.f32 %v558_v24, %v474_v15  ;;  %v630_v27 = vadd.f32 %v629_v25, %v474_v15  ;;  %v560_v28 = vpop.f32.mrb[1].mxu0  ;;  %v631_v29 = vpop.f32.mrb[1].mxu1 }
 0x1b0   :  { %v561_v30 = vadd.f32 %v560_v28, %v474_v15  ;;  %v632_v31 = vadd.f32 %v631_v29, %v474_v15 }
 0x1b2   :  { %v638_v32 = vcombine.low %v559_v26, %v561_v30  ;;  %v639_v33 = vcombine.low %v630_v27, %v632_v31 }
 0x1b4   :  { %642 = vst [vmem:[#allocation7] sm:$0xff] %v638_v32  ;;  %643 = vst [vmem:[#allocation7 + $0x8] sm:$0xff] %v639_v33 }
 0x1b5   :  { %755 = shalt.err (!%p752_p6)
}
 0x1b6   :  { %s756_s28 = scalar_lea.hbm %s1034_s4, 256 }
 0x1b7   :  { %p757_p7 = scmp.ne.s32.totalorder %s1034_s4, %s756_s28  ;;  %p760_p8 = scmp.lt.u32.totalorder %s756_s28, %s1034_s4 }
 0x1b9   :  { %p762_p9 = pnand %p760_p8, %p757_p7 }
 0x1bb   :  { %765 = shalt.err (!%p762_p9)
}
 0x1bc   :  { %653 = dma.vmem_to_hbm [thread:$0]  %s651_s2, 256, %s1034_s4, [#allocation4]  }
 0x1bd   :  { %770 = dma.done.wait [#allocation4], 256  }
 0x1be   :  { %771 = vsyncadd [#allocation4], 4294967040 }
 0x1bf   :  { %657 = vsyncpa [#allocation3], 1 }
 0x1c0   :  { %658 = vsyncpa [#allocation6], 1 }
 0x1c1   :  { %659 = vsyncpa [#allocation4], 1 }

</bundles_post_ra>
